<compile_context>
chip_gen: v6e
topology: v6e:2x2x1
jax: 0.10.0
libtpu: 0.0.40
codegen_flags: <defaults>
</compile_context>

<pallas_src>
import functools

import jax
import jax.numpy as jnp
from jax.experimental import pallas as pl
from jax.experimental.pallas import tpu as pltpu


def _cross_mha_kernel(ct_ref, x_ref,
                      wq_h_ref, bq_h_ref, wkv_ref, bkv_ref,
                      out_ref, att_ref,
                      *, num_heads, depth, emb_dim):
    # ct_ref  : [1, S_q, E]          x_ref  : [1, S_kv, E]
    # wq_h_ref: [H, D, E] (scale pre-folded)   bq_h_ref: [H, 1, D]
    # wkv_ref : [2E, E]  ([Wk; Wv])            bkv_ref : [2E, 1]
    # out_ref : [1, S_q, E]          att_ref: [1, H, S_q, S_kv]
    H, D, E = num_heads, depth, emb_dim
    S_q = ct_ref.shape[1]
    S_kv = x_ref.shape[1]

    ct = ct_ref[0]          # [S_q, E]
    xx = x_ref[0]           # [S_kv, E]

    # ---- Q projection, head-batched (scale already folded into W/b). ----
    # q_h[h, q, d] = sum_e ct[q, e] * Wq_scaled[h*D+d, e] + bq_scaled[h*D+d]
    ct_b = jnp.broadcast_to(ct, (H, S_q, E))                      # cheap leading-dim bcast
    q_h = jnp.einsum('hqe,hde->hqd', ct_b, wq_h_ref[...],
                     preferred_element_type=jnp.float32) + bq_h_ref[...]   # [H, S_q, D]

    # ---- Fused K/V projection in feature-major (transposed) orientation. ----
    # kvT[f, k] = sum_e W_kv[f, e] * x[k, e] + b_kv[f]    (NT matmul, no transposes)
    kvT = jnp.einsum('fe,ke->fk', wkv_ref[...], xx,
                     preferred_element_type=jnp.float32) + bkv_ref[...]    # [2E, S_kv]
    kT_h = kvT[:E].reshape(H, D, S_kv)     # tile-aligned slice + no-op reshape
    vT_h = kvT[E:].reshape(H, D, S_kv)

    # ---- Scores + softmax, all heads batched. ----
    s = jnp.einsum('hqd,hdk->hqk', q_h, kT_h,
                   preferred_element_type=jnp.float32)            # [H, S_q, S_kv]
    # TODO(synk): pad_mask path (masked_fill with -1e9) not wired in; the
    # module is exercised here with pad_mask=None.
    s = s - jnp.max(s, axis=-1, keepdims=True)
    p = jnp.exp(s)
    # Exact reciprocal kept (approx=True would risk the 1e-4 validation tolerance).
    p = p * pl.reciprocal(jnp.sum(p, axis=-1, keepdims=True), approx=False)

    # Single store of the attention weights for this batch element.
    att_ref[0] = p.astype(att_ref.dtype)

    # ---- Attention * V, then one lane-dense [S_q, E] store. ----
    # outT_h[h, d, q] = sum_k vT_h[h, d, k] * p[h, q, k]
    outT_h = jnp.einsum('hdk,hqk->hdq', vT_h, p,
                        preferred_element_type=jnp.float32)       # [H, D, S_q]
    outT = outT_h.reshape(E, S_q)          # no-op merge of (H, D) -> E
    out_ref[0] = outT.T.astype(out_ref.dtype)   # one small 2-D transpose, one store


def cross_multi_attention(x, comment_tree, params, *, emb_dim, num_heads):
    """x: [B, S_kv, E] float32, comment_tree: [B, S_q, E] float32."""
    B, S_kv, E = x.shape
    _, S_q, _ = comment_tree.shape
    assert E == emb_dim and emb_dim % num_heads == 0
    depth = emb_dim // num_heads
    # Note: the PyTorch module scales by emb_dim**-0.5 (not depth**-0.5).
    scale = float(emb_dim) ** (-0.5)

    # --- one-time parameter packing in the wrapper (free on the hot path) ---
    wq_h = (params["wq"] * scale).reshape(num_heads, depth, emb_dim)        # [H, D, E]
    bq_h = (params["bq"].reshape(-1) * scale).reshape(num_heads, 1, depth)  # [H, 1, D]
    w_kv = jnp.concatenate([params["wk"], params["wv"]], axis=0)            # [2E, E]
    b_kv = jnp.concatenate([params["bk"].reshape(-1),
                            params["bv"].reshape(-1)])[:, None]             # [2E, 1]

    kernel = functools.partial(_cross_mha_kernel, num_heads=num_heads,
                               depth=depth, emb_dim=emb_dim)

    def const_spec(shape):
        return pl.BlockSpec(shape, lambda b: (0,) * len(shape))

    out, att = pl.pallas_call(
        kernel,
        out_shape=(
            jax.ShapeDtypeStruct((B, S_q, emb_dim), jnp.float32),
            jax.ShapeDtypeStruct((B, num_heads, S_q, S_kv), jnp.float32),
        ),
        grid_spec=pltpu.PrefetchScalarGridSpec(
            num_scalar_prefetch=0,
            grid=(B,),
            in_specs=[
                pl.BlockSpec((1, S_q, E), lambda b: (b, 0, 0)),    # comment_tree
                pl.BlockSpec((1, S_kv, E), lambda b: (b, 0, 0)),   # x
                const_spec((num_heads, depth, E)),                 # Wq (scaled, per-head)
                const_spec((num_heads, 1, depth)),                 # bq (scaled, per-head)
                const_spec((2 * E, E)),                            # [Wk; Wv]
                const_spec((2 * E, 1)),                            # [bk; bv]
            ],
            out_specs=[
                pl.BlockSpec((1, S_q, E), lambda b: (b, 0, 0)),
                pl.BlockSpec((1, num_heads, S_q, S_kv), lambda b: (b, 0, 0, 0)),
            ],
        ),
        compiler_params=pltpu.CompilerParams(
            dimension_semantics=("parallel",)),
    )(comment_tree, x, wq_h, bq_h, w_kv, b_kv)
    return out, att


def ref_forward(x, comment_tree, params, *, emb_dim, num_heads):
    """Pure-JAX reference mirroring the PyTorch module (pad_mask=None)."""
    B, S_kv, E = x.shape
    S_q = comment_tree.shape[1]
    depth = emb_dim // num_heads
    scale = float(emb_dim) ** (-0.5)

    Q = comment_tree @ params["wq"].T + params["bq"][0]
    K = x @ params["wk"].T + params["bk"][0]
    V = x @ params["wv"].T + params["bv"][0]

    Q = Q.reshape(B, S_q, num_heads, depth).transpose(0, 2, 1, 3)
    K = K.reshape(B, S_kv, num_heads, depth).transpose(0, 2, 1, 3)
    V = V.reshape(B, S_kv, num_heads, depth).transpose(0, 2, 1, 3)

    att = jnp.einsum("bnid,bnjd->bnij", Q, K) * scale
    att = jax.nn.softmax(att, axis=-1)
    out = jnp.einsum("bnij,bnjd->bnid", att, V)
    out = out.transpose(0, 2, 1, 3).reshape(B, S_q, emb_dim)
    return out, att


if __name__ == "__main__":
    B = 2
    S_kv = 16          # "x" sequence length (KV source)
    S_q = 8            # comment_tree sequence length (Q source)
    emb_dim = 32
    num_heads = 4

    key = jax.random.PRNGKey(0)
    k1, k2, k3, k4, k5, k6, k7, k8 = jax.random.split(key, 8)

    x = jax.random.normal(k1, (B, S_kv, emb_dim), jnp.float32)
    comment_tree = jax.random.normal(k2, (B, S_q, emb_dim), jnp.float32)

    init = lambda k, shape: 0.1 * jax.random.normal(k, shape, jnp.float32)
    params = {
        "wq": init(k3, (emb_dim, emb_dim)), "bq": init(k4, (1, emb_dim)),
        "wk": init(k5, (emb_dim, emb_dim)), "bk": init(k6, (1, emb_dim)),
        "wv": init(k7, (emb_dim, emb_dim)), "bv": init(k8, (1, emb_dim)),
    }

    out, att = cross_multi_attention(x, comment_tree, params,
                                     emb_dim=emb_dim, num_heads=num_heads)
    jax.block_until_ready((out, att))

    out_ref, att_ref = ref_forward(x, comment_tree, params,
                                   emb_dim=emb_dim, num_heads=num_heads)

    assert out.shape == (B, S_q, emb_dim)
    assert att.shape == (B, num_heads, S_q, S_kv)
    assert jnp.allclose(out, out_ref, atol=1e-4, rtol=1e-4)
    assert jnp.allclose(att, att_ref, atol=1e-4, rtol=1e-4)

    print("KERNEL_OK")
</pallas_src>

<mosaic_0001>
module attributes {stable_mosaic.version = 11 : i64} {
  func.func @_cross_mha_kernel(%arg0: i32, %arg1: memref<1x8x32xf32, #tpu.memory_space<vmem>>, %arg2: memref<1x16x32xf32, #tpu.memory_space<vmem>>, %arg3: memref<4x8x32xf32, #tpu.memory_space<vmem>>, %arg4: memref<4x1x8xf32, #tpu.memory_space<vmem>>, %arg5: memref<64x32xf32, #tpu.memory_space<vmem>>, %arg6: memref<64x1xf32, #tpu.memory_space<vmem>>, %arg7: memref<1x8x32xf32, #tpu.memory_space<vmem>>, %arg8: memref<1x4x8x16xf32, #tpu.memory_space<vmem>>) attributes {dimension_semantics = [#tpu.dimension_semantics<parallel>], iteration_bounds = array<i64: 2>, scalar_prefetch = 0 : i64, scratch_operands = 0 : i64, tpu.core_type = #tpu.core_type<tc>, window_params = [{transform_indices = @transform_0, window_bounds = array<i64: 1, 8, 32>}, {transform_indices = @transform_1, window_bounds = array<i64: 1, 16, 32>}, {pipeline_mode = #tpu.pipeline_mode<synchronous>, transform_indices = @transform_2, window_bounds = array<i64: 4, 8, 32>}, {pipeline_mode = #tpu.pipeline_mode<synchronous>, transform_indices = @transform_3, window_bounds = array<i64: 4, 1, 8>}, {pipeline_mode = #tpu.pipeline_mode<synchronous>, transform_indices = @transform_4, window_bounds = array<i64: 64, 32>}, {pipeline_mode = #tpu.pipeline_mode<synchronous>, transform_indices = @transform_5, window_bounds = array<i64: 64, 1>}, {transform_indices = @transform_6, window_bounds = array<i64: 1, 8, 32>}, {transform_indices = @transform_7, window_bounds = array<i64: 1, 4, 8, 16>}]} {
    %c0 = arith.constant 0 : index
    %c0_0 = arith.constant 0 : index
    %c0_1 = arith.constant 0 : index
    %0 = vector.load %arg1[%c0, %c0_0, %c0_1] : memref<1x8x32xf32, #tpu.memory_space<vmem>>, vector<1x8x32xf32>
    %1 = vector.shape_cast %0 : vector<1x8x32xf32> to vector<8x32xf32>
    %c0_2 = arith.constant 0 : index
    %c0_3 = arith.constant 0 : index
    %c0_4 = arith.constant 0 : index
    %2 = vector.load %arg2[%c0_2, %c0_3, %c0_4] : memref<1x16x32xf32, #tpu.memory_space<vmem>>, vector<1x16x32xf32>
    %3 = vector.shape_cast %2 : vector<1x16x32xf32> to vector<16x32xf32>
    %4 = vector.shape_cast %1 : vector<8x32xf32> to vector<1x8x32xf32>
    %5 = vector.broadcast %4 : vector<1x8x32xf32> to vector<4x8x32xf32>
    %c0_5 = arith.constant 0 : index
    %c0_6 = arith.constant 0 : index
    %c0_7 = arith.constant 0 : index
    %6 = vector.load %arg3[%c0_5, %c0_6, %c0_7] : memref<4x8x32xf32, #tpu.memory_space<vmem>>, vector<4x8x32xf32>
    "tpu.trace_start"() <{level = 10 : i32, message = "hqe,hde->hqd"}> : () -> ()
    %cst = arith.constant dense<0.000000e+00> : vector<4x8x8xf32>
    %7 = tpu.matmul %5, %6, %cst {dimension_numbers = #tpu.dot_dimension_numbers<[2], [2], [1], [1], [0, 0, 0, 1, 1, 1], [0], [0]>} : vector<4x8x32xf32>, vector<4x8x32xf32>, vector<4x8x8xf32> -> vector<4x8x8xf32>
    "tpu.trace_stop"() : () -> ()
    %c0_8 = arith.constant 0 : index
    %c0_9 = arith.constant 0 : index
    %c0_10 = arith.constant 0 : index
    %8 = vector.load %arg4[%c0_8, %c0_9, %c0_10] : memref<4x1x8xf32, #tpu.memory_space<vmem>>, vector<4x1x8xf32>
    %9 = vector.broadcast %8 : vector<4x1x8xf32> to vector<4x8x8xf32>
    %10 = arith.addf %7, %9 : vector<4x8x8xf32>
    %c0_11 = arith.constant 0 : index
    %c0_12 = arith.constant 0 : index
    %11 = vector.load %arg5[%c0_11, %c0_12] : memref<64x32xf32, #tpu.memory_space<vmem>>, vector<64x32xf32>
    "tpu.trace_start"() <{level = 10 : i32, message = "fe,ke->fk"}> : () -> ()
    %cst_13 = arith.constant dense<0.000000e+00> : vector<64x16xf32>
    %12 = tpu.matmul %11, %3, %cst_13 {dimension_numbers = #tpu.dot_dimension_numbers<[1], [1], [0], [0], [0, 0, 1, 0], [], []>} : vector<64x32xf32>, vector<16x32xf32>, vector<64x16xf32> -> vector<64x16xf32>
    "tpu.trace_stop"() : () -> ()
    %c0_14 = arith.constant 0 : index
    %c0_15 = arith.constant 0 : index
    %13 = vector.load %arg6[%c0_14, %c0_15] : memref<64x1xf32, #tpu.memory_space<vmem>>, vector<64x1xf32>
    %14 = vector.broadcast %13 : vector<64x1xf32> to vector<64x16xf32>
    %15 = arith.addf %12, %14 : vector<64x16xf32>
    %16 = vector.extract_strided_slice %15 {offsets = [0, 0], sizes = [32, 16], strides = [1, 1]} : vector<64x16xf32> to vector<32x16xf32>
    %17 = vector.shape_cast %16 : vector<32x16xf32> to vector<4x8x16xf32>
    %18 = vector.extract_strided_slice %15 {offsets = [32, 0], sizes = [32, 16], strides = [1, 1]} : vector<64x16xf32> to vector<32x16xf32>
    %19 = vector.shape_cast %18 : vector<32x16xf32> to vector<4x8x16xf32>
    "tpu.trace_start"() <{level = 10 : i32, message = "hqd,hdk->hqk"}> : () -> ()
    %cst_16 = arith.constant dense<0.000000e+00> : vector<4x8x16xf32>
    %20 = tpu.matmul %10, %17, %cst_16 {dimension_numbers = #tpu.dot_dimension_numbers<[2], [1], [1], [2], [0, 0, 0, 1, 1, 2], [0], [0]>} : vector<4x8x8xf32>, vector<4x8x16xf32>, vector<4x8x16xf32> -> vector<4x8x16xf32>
    "tpu.trace_stop"() : () -> ()
    %cst_17 = arith.constant dense<0xFF800000> : vector<4x8xf32>
    %21 = vector.multi_reduction <maximumf>, %20, %cst_17 [2] : vector<4x8x16xf32> to vector<4x8xf32>
    %22 = vector.shape_cast %21 : vector<4x8xf32> to vector<4x8x1xf32>
    %23 = vector.broadcast %22 : vector<4x8x1xf32> to vector<4x8x16xf32>
    %24 = arith.subf %20, %23 : vector<4x8x16xf32>
    %25 = math.exp %24 : vector<4x8x16xf32>
    %cst_18 = arith.constant dense<0.000000e+00> : vector<4x8xf32>
    %26 = vector.multi_reduction <add>, %25, %cst_18 [2] : vector<4x8x16xf32> to vector<4x8xf32>
    %27 = vector.shape_cast %26 : vector<4x8xf32> to vector<4x8x1xf32>
    %28 = tpu.reciprocal %27 : vector<4x8x1xf32> -> vector<4x8x1xf32>
    %29 = vector.broadcast %28 : vector<4x8x1xf32> to vector<4x8x16xf32>
    %30 = arith.mulf %25, %29 : vector<4x8x16xf32>
    %c0_19 = arith.constant 0 : index
    %c0_20 = arith.constant 0 : index
    %c0_21 = arith.constant 0 : index
    %c0_22 = arith.constant 0 : index
    %31 = vector.load %arg8[%c0_19, %c0_20, %c0_21, %c0_22] : memref<1x4x8x16xf32, #tpu.memory_space<vmem>>, vector<1x4x8x16xf32>
    %32 = vector.shape_cast %31 : vector<1x4x8x16xf32> to vector<4x8x16xf32>
    %33 = vector.shape_cast %30 : vector<4x8x16xf32> to vector<1x4x8x16xf32>
    tpu.vector_store %arg8[%c0_19, %c0_20, %c0_21, %c0_22], %33 {strides = array<i32>} : memref<1x4x8x16xf32, #tpu.memory_space<vmem>>, vector<1x4x8x16xf32>,
    "tpu.trace_start"() <{level = 10 : i32, message = "hdk,hqk->hdq"}> : () -> ()
    %cst_23 = arith.constant dense<0.000000e+00> : vector<4x8x8xf32>
    %34 = tpu.matmul %19, %30, %cst_23 {dimension_numbers = #tpu.dot_dimension_numbers<[2], [2], [1], [1], [0, 0, 0, 1, 1, 1], [0], [0]>} : vector<4x8x16xf32>, vector<4x8x16xf32>, vector<4x8x8xf32> -> vector<4x8x8xf32>
    "tpu.trace_stop"() : () -> ()
    %35 = vector.shape_cast %34 : vector<4x8x8xf32> to vector<32x8xf32>
    %36 = tpu.transpose %35, [1, 0] : vector<32x8xf32> -> vector<8x32xf32>
    %c0_24 = arith.constant 0 : index
    %c0_25 = arith.constant 0 : index
    %c0_26 = arith.constant 0 : index
    %37 = vector.load %arg7[%c0_24, %c0_25, %c0_26] : memref<1x8x32xf32, #tpu.memory_space<vmem>>, vector<1x8x32xf32>
    %38 = vector.shape_cast %37 : vector<1x8x32xf32> to vector<8x32xf32>
    %39 = vector.shape_cast %36 : vector<8x32xf32> to vector<1x8x32xf32>
    tpu.vector_store %arg7[%c0_24, %c0_25, %c0_26], %39 {strides = array<i32>} : memref<1x8x32xf32, #tpu.memory_space<vmem>>, vector<1x8x32xf32>,
    return
  }
  func.func @transform_0(%arg0: i32) -> (i32, i32, i32) {
    %c0_i32 = arith.constant 0 : i32
    %c0_i32_0 = arith.constant 0 : i32
    %c0_i32_1 = arith.constant 0 : i32
    return %arg0, %c0_i32, %c0_i32_0 : i32, i32, i32
  }
  func.func @transform_1(%arg0: i32) -> (i32, i32, i32) {
    %c0_i32 = arith.constant 0 : i32
    %c0_i32_0 = arith.constant 0 : i32
    %c0_i32_1 = arith.constant 0 : i32
    return %arg0, %c0_i32, %c0_i32_0 : i32, i32, i32
  }
  func.func @transform_2(%arg0: i32) -> (i32, i32, i32) {
    %c0_i32 = arith.constant 0 : i32
    %c0_i32_0 = arith.constant 0 : i32
    %c0_i32_1 = arith.constant 0 : i32
    %c0_i32_2 = arith.constant 0 : i32
    return %c0_i32, %c0_i32_0, %c0_i32_1 : i32, i32, i32
  }
  func.func @transform_3(%arg0: i32) -> (i32, i32, i32) {
    %c0_i32 = arith.constant 0 : i32
    %c0_i32_0 = arith.constant 0 : i32
    %c0_i32_1 = arith.constant 0 : i32
    %c0_i32_2 = arith.constant 0 : i32
    return %c0_i32, %c0_i32_0, %c0_i32_1 : i32, i32, i32
  }
  func.func @transform_4(%arg0: i32) -> (i32, i32) {
    %c0_i32 = arith.constant 0 : i32
    %c0_i32_0 = arith.constant 0 : i32
    %c0_i32_1 = arith.constant 0 : i32
    return %c0_i32, %c0_i32_0 : i32, i32
  }
  func.func @transform_5(%arg0: i32) -> (i32, i32) {
    %c0_i32 = arith.constant 0 : i32
    %c0_i32_0 = arith.constant 0 : i32
    %c0_i32_1 = arith.constant 0 : i32
    return %c0_i32, %c0_i32_0 : i32, i32
  }
  func.func @transform_6(%arg0: i32) -> (i32, i32, i32) {
    %c0_i32 = arith.constant 0 : i32
    %c0_i32_0 = arith.constant 0 : i32
    %c0_i32_1 = arith.constant 0 : i32
    return %arg0, %c0_i32, %c0_i32_0 : i32, i32, i32
  }
  func.func @transform_7(%arg0: i32) -> (i32, i32, i32, i32) {
    %c0_i32 = arith.constant 0 : i32
    %c0_i32_0 = arith.constant 0 : i32
    %c0_i32_1 = arith.constant 0 : i32
    %c0_i32_2 = arith.constant 0 : i32
    return %arg0, %c0_i32, %c0_i32_0, %c0_i32_1 : i32, i32, i32, i32
  }
}

</mosaic_0001>

<bundles_post_ra>
// kernel: tpu_custom_call.1
= control target key start
LH: loop header
LB: loop body
LE: loop exit
PB: predicated region body
PF: predicated region fallthrough
CT: control target
= control target key end

     0   :  { %13 = vsyncpa [#allocation3], 0  ;;  %s2304_s0 = inlined_call_operand.vmem [shape: f32[2,8,32], index: 0, kind: input, shape index: {}]   ;;  %s2305_s1 = inlined_call_operand.vmem [shape: f32[2,16,32], index: 1, kind: input, shape index: {}]   ;;  %s2306_s2 = inlined_call_operand.vmem [shape: f32[4,8,32], index: 2, kind: input, shape index: {}]   ;;  %s2307_s3 = inlined_call_operand.vmem [shape: f32[4,1,8], index: 3, kind: input, shape index: {}]   ;;  %s2308_s4 = inlined_call_operand.vmem [shape: f32[64,32], index: 4, kind: input, shape index: {}]   ;;  %s2309_s5 = inlined_call_operand.vmem [shape: f32[64,1], index: 5, kind: input, shape index: {}]   ;;  %s2310_s6 = inlined_call_operand.hbm [shape: f32[2,8,32], index: 6, kind: output, shape index: {0}]   ;;  %s2311_s7 = inlined_call_operand.hbm [shape: f32[2,4,8,16], index: 7, kind: output, shape index: {1}]  }
   0x1   :  { %15 = vsyncpa [#allocation3 + $0x1], 0 }
   0x2   :  { %16 = vsyncpa [#allocation5], 0 }
   0x3   :  { %18 = vsyncpa [#allocation5 + $0x1], 0  ;;  %s2012_s24 = smov 0   ;;  %s2014_s25 = smov 0  }
   0x4   :  { %s2016_s26 = smov 0   ;;  %s2018_s27 = smov 0  }
   0x5 LB: > { %s2033_s28 = sadd.s32 4294967295, %s1963_s27   ;;  %s1644_s29 = sadd.s32 4294967294, %s1963_s27   ;;  %s1963_s27 = sphi %s2018_s27, %s2317_s27   ;;  %s1959_s26 = sphi %s2016_s26, %s2316_s26   ;;  %s1955_s25 = sphi %s2014_s25, %s2315_s25   ;;  %s1951_s24 = sphi %s2012_s24, %s2314_s24  }
   0x6   : > { %s2037_s30 = sadd.s32 1, %s1963_s27   ;;  %s167_s8 = sadd.s32 1, %s1959_s26 }
   0x7   : > { %s164_s9 = ssub.s32 %s1963_s27, %s2037_s30  ;;  %p177_p0 = scmp.ne.s32.totalorder %s1959_s26, %s1955_s25 }
   0x8   : > { %p165_p1 = scmp.eq.s32.totalorder %s164_s9, 0  ;;  %p178_p2 = scmp.eq.s32.totalorder %s2033_s28, 1 }
   0x9   : > { %p183_p3 = scmp.ne.s32.totalorder %s1955_s25, %s1951_s24  ;;  %p184_p4 = scmp.eq.s32.totalorder %s1644_s29, 1 }
   0xa   : > { %s2048_s10 = scalar_select %p165_p1, %s1959_s26, %s167_s8  }
   0xb   : > { %p2050_p5 = por %p178_p2, %p177_p0  ;;  %p2054_p6 = por %p184_p4, %p183_p3 }
   0xc   : > { %p1647_p7 = scmp.ge.s32.totalorder %s1963_s27, 1  ;;  %p255_p8 = scmp.lt.s32.totalorder %s1963_s27, 3 }
   0xe   : > { %p256_p9 = pnand %p1647_p7, %p255_p8 }
   0xf   : > { %p296_p10 = scmp.lt.s32.totalorder (!%p256_p9), %s2033_s28, 1  ;;  %s2203_s14 = sand.u32 (!%p256_p9), 1, %s1955_s25  }
  0x10   : > { %259 = sbr.rel (%p256_p9) target bundleno = 1088 (0x440), region = 44  ;;  %s1649_s15 = sshll.u32 (!%p256_p9), %s2203_s14, 5 }
  0x11   : > { %s2207_s16 = scalar_lea.vmem (!%p256_p9), [#allocation4], %s1649_s15  ;;  %s1968_s29 = smov (!%p256_p9), [#allocation4]  }
  0x12   : > { %s1877_s8 = sshll.u32 (!%p256_p9), %s1968_s29, 4  ;;  %s1878_s8 = int_to_ptr.vmem [resolvable:$false] %s1877_s8 }
  0x15   : > { %v308_v0 = vld [vmem:[%s2306_s2] sm:$0xff]  ;;  %vm340_vm0 = vcmask 261120   ;;  %v1965_v1 = vmov 0.0   ;;  %vm1966_vm1 = vmmov 0   ;;  %v309_v2 = vld [vmem:[%s2306_s2 + $0x8] sm:$0xff]  ;;  %s297_s17 = scalar_select %p296_p10, %s2033_s28, 1 }
  0x16   : > { %1730 = vmatprep.subr.mxu0 %v1965_v1  ;;  %1732 = vmatprep.mubr.msk.f32.mxu0 %vm1966_vm1, %v1965_v1  ;;  %v644_v3 = vld [vmem:[%s2309_s5] sm:$0xff]  ;;  %v646_v4 = vld [vmem:[%s2309_s5 + $0x10] sm:$0xff]  ;;  %v1967_v6 = vmov 0   ;;  %v311_v9 = vld [vmem:[%s2306_s2 + $0x18] sm:$0xff]  ;;  %vm827_vm2 = vcmask 64512   ;;  %vm1120_vm3 = vcmask 130048  }
  0x17   : > { %1731 = vmatpush3.xpose.msk.msra.mxu0 %vm340_vm0, %v308_v0  ;;  %1735 = vmatprep.subr.mxu1 %v1965_v1  ;;  %s1650_s22 = sshll.u32 %s297_s17, 3  ;;  %s1694_s23 = sshll.u32 %s297_s17, 4  ;;  %v310_v5 = vld [vmem:[%s2306_s2 + $0x10] sm:$0xff]  ;;  %v645_v10 = vld [vmem:[%s2309_s5 + $0x8] sm:$0xff]  ;;  %v647_v11 = vld [vmem:[%s2309_s5 + $0x18] sm:$0xff] }
  0x18   : > { %1740 = vmatprep.subr.mxu0 %v1965_v1  ;;  %1736 = vmatpush3.xpose.msk.msra.mxu1 %vm340_vm0, %v309_v2  ;;  %s299_s9 = scalar_lea.vmem %s2304_s0, %s1650_s22  ;;  %s304_s18 = scalar_lea.vmem %s2305_s1, %s1694_s23  ;;  %v636_v12 = vld [vmem:[%s2308_s4] sm:$0xff]  ;;  %v637_v14 = vld [vmem:[%s2308_s4 + $0x8] sm:$0xff]  ;;  %v638_v15 = vld [vmem:[%s2308_s4 + $0x10] sm:$0xff] }
  0x19   : > { %1737 = vmatprep.mubr.msk.f32.mxu1 %vm1966_vm1, %v1965_v1  ;;  %1745 = vmatprep.subr.mxu1 %v1965_v1  ;;  %v305_v7 = vld [vmem:[%s299_s9] sm:$0xff]  ;;  %v307_v8 = vld [vmem:[%s304_s18 + $0x8] sm:$0xff]  ;;  %v639_v16 = vld [vmem:[%s2308_s4 + $0x18] sm:$0xff]  ;;  %s1695_s17 = sshll.u32 %s2033_s28, 9  ;;  %s1512_s22 = scalar_lea.sflag [#allocation5], %s2203_s14 }
  0x1a   : > { %1855 = vset.pattern.permute.xlu0 %v1967_v6  ;;  %1856 = vset.pattern.permute.xlu1 %v1967_v6  ;;  %v306_v13 = vld [vmem:[%s304_s18] sm:$0xff]  ;;  %v641_v18 = vld [vmem:[%s2308_s4 + $0x28] sm:$0xff]  ;;  %v642_v47 = vld [vmem:[%s2308_s4 + $0x30] sm:$0xff]  ;;  %s1538_s18 = sshll.u32 %s2207_s16, 4  ;;  %s2237_s21 = scalar_lea.hbm %s2311_s7, %s1695_s17  ;;  %s2231_s18 = int_to_ptr.vmem [resolvable:$true] %s1538_s18 }
  0x1b   : > { %654 = vperm.xlu0 %1855, %v644_v3   ;;  %664 = vperm.xlu1 %1856, %v646_v4   ;;  %v640_v17 = vld [vmem:[%s2308_s4 + $0x20] sm:$0xff]  ;;  %v643_v48 = vld [vmem:[%s2308_s4 + $0x38] sm:$0xff]  ;;  %s1873_s23 = scalar_lea.vmem %s2231_s18, 512  ;;  %s1879_s9 = scalar_lea.vmem %s1878_s8, 1024 }
  0x1c   : > { %1733 = vmatmul.mubr.msk.f32.vlgmr.msra.gmra.mxu0 %vm340_vm0, %v305_v7  ;;  %1738 = vmatmul.mubr.msk.f32.vlgmr.msra.gmra.mxu1 %vm340_vm0, %v305_v7  ;;  %v1653_v29 = vld [vmem:[%s2307_s3] ss:$0 sm:$0xff]  ;;  %v1654_v33 = vld [vmem:[%s2307_s3 + $0x1] ss:$0 sm:$0xff]  ;;  %v1655_v41 = vld [vmem:[%s2307_s3 + $0x2] ss:$0 sm:$0xff]  ;;  %p1874_p11 = scmp.ne.s32.totalorder %s2231_s18, %s1873_s23  ;;  %p1880_p0 = scmp.lt.s32.totalorder %s2231_s18, %s1878_s8 }
  0x1d   : > { %1741 = vmatpush3.xpose.msk.msra.mxu0 %vm340_vm0, %v310_v5  ;;  %1742 = vmatprep.mubr.msk.f32.mxu0 %vm1966_vm1, %v1965_v1  ;;  %v1656_v43 = vld [vmem:[%s2307_s3 + $0x3] ss:$0 sm:$0xff]  ;;  %p1881_p1 = scmp.lt.s32.totalorder %s1879_s9, %s1873_s23 }
  0x1e   : > { %1750 = vmatprep.subr.msk.mxu0 %vm340_vm0, %v307_v8  ;;  %1746 = vmatpush3.xpose.msk.msra.mxu1 %vm340_vm0, %v311_v9  ;;  %v648_v61 = vld [vmem:[%s2309_s5 + $0x20] sm:$0xff]  ;;  %p1875_p12 = pnand %p1874_p11, %p2050_p5 }
  0x1f   : > { %1747 = vmatprep.mubr.msk.f32.mxu1 %vm1966_vm1, %v1965_v1  ;;  %659 = vperm.xlu0 %1855, %v645_v10   ;;  %p1882_p2 = por %p1881_p1, %p1880_p0 }
  0x20   : > { %1743 = vmatmul.mubr.msk.f32.vlgmr.msra.gmra.mxu0 %vm340_vm0, %v305_v7  ;;  %669 = vperm.xlu1 %1856, %v647_v11   ;;  %p1876_p13 = pneg %p1875_p12 }
  0x21   : > { %1751 = vmatpush3.xpose.msk.msra.mxu0 %vm340_vm0, %v307_v8  ;;  %1754 = vmatprep.mubr.msk.f32.mxu0 %vm340_vm0, %v636_v12 }
  0x22   : > { %1752 = vmatprep.subr.msk.mxu0 %vm340_vm0, %v306_v13  ;;  %1748 = vmatmul.mubr.msk.f32.vlgmr.msra.gmra.mxu1 %vm340_vm0, %v305_v7  ;;  %p1883_p3 = pnand %p1882_p2, %p1876_p13 }
  0x23   : > { %1766 = vmatprep.subr.mxu1 %v1965_v1  ;;  %1768 = vmatprep.mubr.msk.f32.mxu1 %vm1966_vm1, %v1965_v1 }
  0x25   : > { %1753 = vmatpush3.xpose.msk.msra.mxu0 %vm340_vm0, %v306_v13 }
  0x26   : > { %1791 = vmatprep.subr.mxu0 %v1965_v1 }
  0x28   : > { %1755 = vmatmul.mubr.msk.f32.vlgmr.msra.gmra.mxu0 %vm340_vm0, %v637_v14 }
  0x29   : > { %1757 = vmatprep.mubr.msk.f32.mxu0 %vm340_vm0, %v638_v15 }
  0x2c   : > { %1758 = vmatmul.mubr.msk.f32.gmra.mxu0 %vm340_vm0, %v639_v16 }
  0x2d   : > { %1760 = vmatprep.mubr.msk.f32.mxu0 %vm340_vm0, %v640_v17 }
  0x30   : > { %1761 = vmatmul.mubr.msk.f32.gmra.mxu0 %vm340_vm0, %v641_v18 }
  0x31   : > { %1763 = vmatprep.mubr.msk.f32.mxu0 %vm340_vm0, %v642_v47 }
  0x34   : > { %1764 = vmatmul.mubr.msk.f32.gmra.mxu0 %vm340_vm0, %v643_v48 }
  0x35   : > { %1793 = vmatprep.mubr.msk.f32.mxu0 %vm1966_vm1, %v1965_v1 }
  0x96   : > { %v655_v26 = vpop.permute.xlu0 %654  ;;  %v665_v36 = vpop.permute.xlu1 %664 }
  0x9a   : > { %v660_v30 = vpop.permute.xlu0 %659 }
  0x9b   : > { %v670_v42 = vpop.permute.xlu1 %669 }
  0xdc   : > { %v413_v19 = vpop.f32.mrf.mxu0  ;;  %v486_v20 = vpop.f32.mrf.mxu1 }
  0xdd   : > { %v414_v34 = vadd.f32 %v1653_v29, %v413_v19  ;;  %v487_v38 = vadd.f32 %v1654_v33, %v486_v20  ;;  %v650_v19 = vld [vmem:[%s2309_s5 + $0x30] sm:$0xff]  ;;  %v651_v20 = vld [vmem:[%s2309_s5 + $0x38] sm:$0xff] }
  0xde   : > { %v1734_v21 = vpop.f32.mrf.mxu0  ;;  %v1739_v22 = vpop.f32.mrf.mxu1 }
  0xdf   : > { %v649_v21 = vld [vmem:[%s2309_s5 + $0x28] sm:$0xff] }
  0xe0   : > { %v559_v23 = vpop.f32.mrf.mxu0 }
  0xe1   : > { %v560_v44 = vadd.f32 %v1655_v41, %v559_v23 }
  0xe2   : > { %v1744_v24 = vpop.f32.mrf.mxu0  ;;  %v632_v25 = vpop.f32.mrf.mxu1 }
  0xe3   : > { %v633_v46 = vadd.f32 %v1656_v43, %v632_v25 }
  0xe4   : > { %v1749_v27 = vpop.f32.mrf.mxu1 }
  0xe8   : > { %v1756_v28 = vpop.f32.mrf.mxu0 }
  0xe9   : > { %v794_v37 = vadd.f32 %v1756_v28, %v660_v30 }
  0xea   : > { %v788_v31 = vpop.f32.mrf.mxu0 }
  0xeb   : > { %v789_v32 = vadd.f32 %v788_v31, %v655_v26 }
  0xec   : > { %v1759_v35 = vpop.f32.mrf.mxu0 }
  0xed   : > { %1767 = vmatpush3.msra.mxu1 %v789_v32  ;;  %v804_v45 = vadd.f32 %v1759_v35, %v670_v42 }
  0xee   : > { %1769 = vmatmul.mubr.msk.f32.vlgmr.msra.gmra.mxu1 %vm827_vm2, %v414_v34  ;;  %1771 = vmatprep.subr.mxu1 %v1965_v1  ;;  %v798_v39 = vpop.f32.mrf.mxu0 }
  0xef   : > { %1772 = vmatpush3.msra.mxu1 %v794_v37  ;;  %1773 = vmatprep.mubr.msk.f32.mxu1 %vm1966_vm1, %v1965_v1  ;;  %v799_v40 = vadd.f32 %v798_v39, %v665_v36 }
  0xf0   : > { %1776 = vmatprep.subr.mxu1 %v1965_v1  ;;  %v1762_v26 = vpop.f32.mrf.mxu0 }
  0xf2   : > { %1774 = vmatmul.mubr.msk.f32.vlgmr.msra.gmra.mxu1 %vm827_vm2, %v487_v38  ;;  %v808_v29 = vpop.f32.mrf.mxu0 }
  0xf3   : > { %1777 = vmatpush3.msra.mxu1 %v799_v40  ;;  %1778 = vmatprep.mubr.msk.f32.mxu1 %vm1966_vm1, %v1965_v1 }
  0xf4   : > { %1781 = vmatprep.subr.mxu1 %v1965_v1  ;;  %v1765_v33 = vpop.f32.mrf.mxu0 }
  0xf6   : > { %1779 = vmatmul.mubr.msk.f32.vlgmr.msra.gmra.mxu1 %vm827_vm2, %v560_v44  ;;  %v818_v39 = vpop.f32.mrf.mxu0 }
  0xf7   : > { %1782 = vmatpush3.msra.mxu1 %v804_v45  ;;  %1783 = vmatprep.mubr.msk.f32.mxu1 %vm1966_vm1, %v1965_v1 }
  0xf8   : > { %1786 = vmatprep.subr.mxu1 %v1965_v1 }
  0xfa   : > { %1784 = vmatmul.mubr.msk.f32.vlgmr.msra.gmra.mxu1 %vm827_vm2, %v633_v46 }
  0xfb   : > { %1788 = vmatprep.mubr.msk.f32.mxu1 %vm1966_vm1, %v1965_v1 }
 0x1ae   : > { %v897_v49 = vpop.f32.mrf.mxu1 }
 0x1af   : > { %v1121_v50 = vsel %vm1120_vm3, %v897_v49, -inf }
 0x1b0   : > { %1122 = vmax.xlane.f32.xlu0 %v1121_v50  ;;  %v1770_v51 = vpop.f32.mrf.mxu1 }
 0x1b2   : > { %v970_v52 = vpop.f32.mrf.mxu1 }
 0x1b3   : > { %v1124_v53 = vsel %vm1120_vm3, %v970_v52, -inf }
 0x1b4   : > { %1125 = vmax.xlane.f32.xlu1 %v1124_v53  ;;  %v1775_v54 = vpop.f32.mrf.mxu1 }
 0x1b6   : > { %v1043_v55 = vpop.f32.mrf.mxu1 }
 0x1b7   : > { %v1127_v56 = vsel %vm1120_vm3, %v1043_v55, -inf }
 0x1b8   : > { %1128 = vmax.xlane.f32.xlu0 %v1127_v56  ;;  %v1780_v57 = vpop.f32.mrf.mxu1 }
 0x1ba   : > { %v1116_v58 = vpop.f32.mrf.mxu1 }
 0x1bb   : > { %v1130_v59 = vsel %vm1120_vm3, %v1116_v58, -inf }
 0x1bc   : > { %1131 = vmax.xlane.f32.xlu0 %v1130_v59  ;;  %v1785_v60 = vpop.f32.mrf.mxu1 }
 0x1c5   : > { %674 = vperm.xlu1 %1856, %v648_v61  }
 0x239   : > { %v1123_v62 = vpop.xlane.xlu0 %1122 }
 0x23a   : > { %v1133_v63 = vsub.f32 %v897_v49, %v1123_v62 }
 0x23c   : > { %v1137_v0 = vmul.f32 1.442695, %v1133_v63 }
 0x23d   : > { %v1126_v2 = vpop.xlane.xlu1 %1125 }
 0x23e   : > { %1857 = vpow2.f32 %v1137_v0  ;;  %v1134_v3 = vsub.f32 %v970_v52, %v1126_v2 }
 0x240   : > { %v1139_v4 = vmul.f32 1.442695, %v1134_v3 }
 0x241   : > { %v1129_v5 = vpop.xlane.xlu0 %1128  ;;  %v675_v22 = vpop.permute.xlu1 %674 }
 0x242   : > { %1859 = vpow2.f32 %v1139_v4  ;;  %v1135_v6 = vsub.f32 %v1043_v55, %v1129_v5  ;;  %v809_v32 = vadd.f32 %v808_v29, %v675_v22 }
 0x244   : > { %v1141_v7 = vmul.f32 1.442695, %v1135_v6 }
 0x245   : > { %v1132_v8 = vpop.xlane.xlu0 %1131 }
 0x246   : > { %1861 = vpow2.f32 %v1141_v7  ;;  %v1136_v9 = vsub.f32 %v1116_v58, %v1132_v8 }
 0x248   : > { %v1143_v10 = vmul.f32 1.442695, %v1136_v9 }
 0x24a   : > { %1863 = vpow2.f32 %v1143_v10 }
 0x24b   : > { %v1858_v11 = vpop.eup %1857 }
 0x24c   : > { %v1145_v12 = vsel %vm1120_vm3, %v1858_v11, 0.0 }
 0x24d   : > { %1146 = vadd.xlane.f32.xlu1 %v1145_v12 }
 0x24f   : > { %v1860_v13 = vpop.eup %1859 }
 0x250   : > { %v1148_v14 = vsel %vm1120_vm3, %v1860_v13, 0.0 }
 0x251   : > { %1149 = vadd.xlane.f32.xlu0 %v1148_v14 }
 0x253   : > { %v1862_v15 = vpop.eup %1861 }
 0x254   : > { %v1151_v16 = vsel %vm1120_vm3, %v1862_v15, 0.0 }
 0x255   : > { %1152 = vadd.xlane.f32.xlu1 %v1151_v16 }
 0x257   : > { %v1864_v17 = vpop.eup %1863 }
 0x258   : > { %v1154_v18 = vsel %vm1120_vm3, %v1864_v17, 0.0 }
 0x259   : > { %1155 = vadd.xlane.f32.xlu0 %v1154_v18 }
 0x266   : > { %684 = vperm.xlu1 %1856, %v650_v19  }
 0x26a   : > { %689 = vperm.xlu1 %1856, %v651_v20  }
 0x26f   : > { %679 = vperm.xlu0 %1855, %v649_v21  }
 0x2d6   : > { %v1147_v23 = vpop.xlane.xlu1 %1146 }
 0x2d7   : > { %1865 = vrcp.f32 %v1147_v23 }
 0x2da   : > { %v1150_v24 = vpop.xlane.xlu0 %1149 }
 0x2db   : > { %1867 = vrcp.f32 %v1150_v24 }
 0x2de   : > { %v1153_v25 = vpop.xlane.xlu1 %1152 }
 0x2df   : > { %1869 = vrcp.f32 %v1153_v25 }
 0x2e2   : > { %v1156_v27 = vpop.xlane.xlu0 %1155  ;;  %v685_v36 = vpop.permute.xlu1 %684 }
 0x2e3   : > { %1871 = vrcp.f32 %v1156_v27  ;;  %v819_v42 = vadd.f32 %v818_v39, %v685_v36 }
 0x2e4   : > { %v1866_v28 = vpop.eup %1865 }
 0x2e5   : > { %v1161_v30 = vmul.f32 %v1866_v28, %v1858_v11 }
 0x2e6   : > { %v690_v43 = vpop.permute.xlu1 %689 }
 0x2e7   : > { %1787 = vmatpush3.xpose.msk.msra.mxu1 %vm1120_vm3, %v1161_v30  ;;  %1165 = vst.msk [vmem:[%s2207_s16] sm:$0xff] %vm1120_vm3, %v1161_v30  ;;  %v824_v45 = vadd.f32 %v1765_v33, %v690_v43 }
 0x2e8   : > { %v1868_v31 = vpop.eup %1867  ;;  %1796 = vmatprep.subr.mxu1 %v1965_v1 }
 0x2e9   : > { %v1162_v34 = vmul.f32 %v1868_v31, %v1860_v13 }
 0x2ea   : > { %1789 = vmatmul.mubr.msk.f32.vlgmr.msra.gmra.mxu1 %vm1120_vm3, %v809_v32  ;;  %v680_v35 = vpop.permute.xlu0 %679 }
 0x2eb   : > { %v814_v37 = vadd.f32 %v1762_v26, %v680_v35  ;;  %1792 = vmatpush3.xpose.msk.msra.mxu0 %vm1120_vm3, %v1162_v34  ;;  %1798 = vmatprep.mubr.msk.f32.mxu1 %vm1966_vm1, %v1965_v1  ;;  %1166 = vst.msk [vmem:[%s2207_s16 + $0x8] sm:$0xff] %vm1120_vm3, %v1162_v34 }
 0x2ec   : > { %v1870_v38 = vpop.eup %1869  ;;  %1801 = vmatprep.subr.mxu0 %v1965_v1 }
 0x2ed   : > { %v1163_v40 = vmul.f32 %v1870_v38, %v1862_v15 }
 0x2ee   : > { %1794 = vmatmul.mubr.msk.f32.vlgmr.msra.gmra.mxu0 %vm1120_vm3, %v814_v37 }
 0x2ef   : > { %1797 = vmatpush3.xpose.msk.msra.mxu1 %vm1120_vm3, %v1163_v40  ;;  %1803 = vmatprep.mubr.msk.f32.mxu0 %vm1966_vm1, %v1965_v1  ;;  %1167 = vst.msk [vmem:[%s2207_s16 + $0x10] sm:$0xff] %vm1120_vm3, %v1163_v40 }
 0x2f0   : > { %v1872_v41 = vpop.eup %1871 }
 0x2f1   : > { %v1164_v44 = vmul.f32 %v1872_v41, %v1864_v17 }
 0x2f2   : > { %1799 = vmatmul.mubr.msk.f32.vlgmr.msra.gmra.mxu1 %vm1120_vm3, %v819_v42 }
 0x2f3   : > { %1802 = vmatpush3.xpose.msk.msra.mxu0 %vm1120_vm3, %v1164_v44  ;;  %1168 = vst.msk [vmem:[%s2207_s16 + $0x18] sm:$0xff] %vm1120_vm3, %v1164_v44 }
 0x2f6   : > { %1804 = vmatmul.mubr.msk.f32.vlgmr.msra.gmra.mxu0 %vm1120_vm3, %v824_v45 }
 0x3aa   : > { %v1241_v1 = vpop.f32.mrf.mxu1 }
 0x3ab   : > { %1473 = vxpose.xlu0.b32.start [1/4] (short) (narrow) %v1241_v1, 8 }
 0x3ac   : > { %v1790_v46 = vpop.f32.mrf.mxu1 }
 0x3ae   : > { %v1317_v47 = vpop.f32.mrf.mxu0 }
 0x3af   : > { %1886 = shalt.err (!%p1883_p3)
}
 0x3b0   : > { %s1887_s13 = scalar_lea.hbm %s2237_s21, 512  ;;  %s1891_s17 = scalar_lea.hbm %s2311_s7, 1024 }
 0x3b1   : > { %p1888_p4 = scmp.ne.s32.totalorder %s2237_s21, %s1887_s13  ;;  %p1892_p9 = scmp.lt.s32.totalorder %s2237_s21, %s2311_s7 }
 0x3b2   : > { %p1893_p10 = scmp.lt.s32.totalorder %s1891_s17, %s1887_s13 }
 0x3b3   : > { %p1889_p7 = pnand %p1888_p4, %p2050_p5 }
 0x3b4   : > { %p1894_p11 = por %p1893_p10, %p1892_p9 }
 0x3b5   : > { %p1890_p8 = pneg %p1889_p7 }
 0x3b7   : > { %p1895_p12 = pnand %p1894_p11, %p1890_p8 }
 0x3b9   : > { %1898 = shalt.err (!%p1895_p12)
}
 0x3ba   : > { %s1969_s23 = smov 128   ;;  %s1970_s29 = smov 8   ;;  %1474 = vxpose.xlu0.b32.cont [2/4] (short) (narrow) %v1317_v47, 8  ;;  %v1795_v48 = vpop.f32.mrf.mxu0  ;;  %v1393_v49 = vpop.f32.mrf.mxu1 }
 0x3bb   : > { %1807 = dma.vmem_to_hbm [thread:$0]  (%p2050_p5), %s2231_s18, 512, %s2237_s21, %s1512_s22, %s1969_s23, %s1969_s23, %s1970_s29  }
 0x3bc   : > { %v1800_v50 = vpop.f32.mrf.mxu1  ;;  %v1469_v51 = vpop.f32.mrf.mxu0  ;;  %s1648_s8 = sshll.u32 %s2203_s14, 3  ;;  %s1689_s9 = sshll.u32 %s2033_s28, 7 }
 0x3bd   : > { %s288_s13 = scalar_lea.vmem [#allocation2], %s1648_s8  ;;  %s2267_s19 = scalar_lea.hbm %s2310_s6, %s1689_s9 }
 0x3be   : > { %1475 = vxpose.xlu0.b32.cont [3/4] (short) (narrow) %v1393_v49, 8  ;;  %v1805_v52 = vpop.f32.mrf.mxu0  ;;  %s1525_s15 = sshll.u32 %s288_s13, 4  ;;  %s1507_s18 = scalar_lea.sflag [#allocation3], %s2203_s14  ;;  %s1526_s15 = int_to_ptr.vmem [resolvable:$true] %s1525_s15 }
 0x3bf   : > { %s1899_s21 = scalar_lea.vmem %s1526_s15, 128  ;;  %s1971_s22 = smov [#allocation2]  }
 0x3c0   : > { %p1900_p13 = scmp.ne.s32.totalorder %s1526_s15, %s1899_s21  ;;  %s1903_s20 = sshll.u32 %s1971_s22, 4  ;;  %s1904_s20 = int_to_ptr.vmem [resolvable:$false] %s1903_s20 }
 0x3c1   : > { %s1905_s28 = scalar_lea.vmem %s1904_s20, 256  ;;  %p1906_p2 = scmp.lt.s32.totalorder %s1526_s15, %s1904_s20 }
 0x3c2   : > { %1476 = vxpose.xlu0.b32.end [4/4] (short) (narrow) %v1469_v51, 8  ;;  %p1901_p0 = pnand %p1900_p13, %p2050_p5  ;;  %p1907_p3 = scmp.lt.s32.totalorder %s1905_s28, %s1899_s21 }
 0x3c4   : > { %p1902_p1 = pneg %p1901_p0  ;;  %p1908_p4 = por %p1907_p3, %p1906_p2 }
 0x3c6   : > { %p1909_p7 = pnand %p1908_p4, %p1902_p1 }
 0x432   : > { %v1489_v53 = vpop.trf.xlu0 }
 0x433   : > { %1505 = vst.msk [vmem:[%s288_s13] sm:$0xff] %vm340_vm0, %v1489_v53 }
 0x434   : > { %1912 = shalt.err (!%p1909_p7)
}
 0x435   : > { %s1913_s23 = scalar_lea.hbm %s2267_s19, 128  ;;  %s1917_s8 = scalar_lea.hbm %s2310_s6, 256 }
 0x436   : > { %p1914_p8 = scmp.ne.s32.totalorder %s2267_s19, %s1913_s23  ;;  %p1918_p11 = scmp.lt.s32.totalorder %s2267_s19, %s2310_s6 }
 0x437   : > { %p1919_p12 = scmp.lt.s32.totalorder %s1917_s8, %s1913_s23 }
 0x438   : > { %p1915_p9 = pnand %p1914_p8, %p2050_p5 }
 0x439   : > { %p1920_p13 = por %p1919_p12, %p1918_p11 }
 0x43a   : > { %p1916_p10 = pneg %p1915_p9 }
 0x43c   : > { %p1921_p0 = pnand %p1920_p13, %p1916_p10 }
 0x43e   : > { %1924 = shalt.err (!%p1921_p0)
}
 0x43f   : > { %1806 = dma.vmem_to_hbm [thread:$0]  (%p2050_p5), %s1526_s15, 128, %s2267_s19, %s1507_s18  }
 0x440 PF: > { %p1817_p1 = scmp.ge.s32.totalorder %s1963_s27, 2  ;;  %s1553_s16 = sand.u32 1, %s1951_s24  }
 0x441   : > { %s1554_s17 = scalar_lea.sflag [#allocation3], %s1553_s16 }
 0x442   : > { %p1811_p2 = pnand %p1817_p1, %p2054_p6 }
 0x444   : > { %p1812_p3 = pneg %p1811_p2 }
 0x446   : > { %1942 = dma.done.wait (%p1812_p3), %s1554_s17, 128  }
 0x447   : > { %1944 = vsyncadd (%p1812_p3), %s1554_s17, 4294967168  ;;  %s1563_s21 = scalar_lea.sflag [#allocation5], %s1553_s16 }
 0x448   : > { %1946 = dma.done.wait (%p1812_p3), %s1563_s21, 512  }
 0x449   : > { %1948 = vsyncadd (%p1812_p3), %s1563_s21, 4294966784  ;;  %p21_p5 = scmp.ge.s32.totalorder %s2037_s30, 4   ;;  %s2314_s24 = smov %s1955_s25 }
 0x44a   : > { %s2315_s25 = smov %s1959_s26  ;;  %s2316_s26 = smov %s2048_s10 }
 0x44b   : > { %s2317_s27 = smov %s2037_s30  ;;  %23 = sbr.rel (!%p21_p5) target bundleno = 5 (0x5), region = 99 }
 0x450   :  { %1568 = vsyncpa [#allocation3], 1 }
 0x451   :  { %1570 = vsyncpa [#allocation3 + $0x1], 1 }
 0x452   :  { %1571 = vsyncpa [#allocation5], 1 }
 0x453   :  { %1573 = vsyncpa [#allocation5 + $0x1], 1 }

</bundles_post_ra>
